<compile_context>
chip_gen: v7x
topology: tpu7x:2x2x1
jax: 0.10.0
libtpu: 0.0.40
codegen_flags: <defaults>
</compile_context>

<pallas_src>
import jax
import jax.numpy as jnp
from jax.experimental import pallas as pl
from jax.experimental.pallas import tpu as pltpu


def _add_kernel(a_ref, b_ref, o_ref):
    # Whole tile resides in VMEM; single VPU elementwise add.
    o_ref[...] = a_ref[...] + b_ref[...]


def _sublane_multiple(dtype) -> int:
    """Row-alignment requirement: sub-32-bit dtypes pack along sublanes."""
    itemsize = jnp.dtype(dtype).itemsize
    return {4: 8, 2: 16, 1: 32}.get(itemsize, 8)


def _lane_dense_factorization(total: int, sub: int):
    """Pick (rows, lanes): lanes % 128 == 0 and rows % sub == 0.

    Prefer factorizations whose rows also split into 2 equal sub-aligned
    blocks (lets v7x use both TensorCores with no partial block). Returns
    None if no zero-padding factorization exists (caller pads).
    """
    best = None
    for lanes in (1024, 512, 256, 128):
        if total % lanes:
            continue
        rows = total // lanes
        if rows % sub:
            continue
        if rows % (2 * sub) == 0:
            return rows, lanes
        if best is None:
            best = (rows, lanes)
    return best


def _per_block_byte_cap() -> int:
    """Per-operand block budget that fits every generation's scoped VMEM.

    2 inputs + 1 output, double-buffered => 6 * cap must fit the default
    scoped limit (v5e: 16 MiB). When hardware info is queryable, also bound
    by physical VMEM (v7x has only 64 MiB per TensorCore).
    """
    cap = 2 << 20  # 2 MiB -> 12 MiB pipeline footprint, fits v5e default
    try:
        vmem = pltpu.get_tpu_info().vmem_capacity_bytes
        cap = max(1 << 20, min(cap, vmem // 48))
    except Exception:
        pass
    return cap


def _pick_block_rows(rows: int, lanes: int, itemsize: int, sub: int) -> int:
    """Largest sub-aligned exact divisor of rows under the VMEM cap.

    Requires >=2 blocks when rows % (2*sub) == 0 so the 'parallel' grid axis
    actually has work for v7x's second TensorCore. Exact division keeps every
    grid step full-rate (no padded/masked final block).
    """
    cap = _per_block_byte_cap()
    max_block_rows = max(sub, (cap // (lanes * itemsize) // sub) * sub)
    min_blocks = 2 if (rows % (2 * sub) == 0 and rows >= 2 * sub) else 1
    start = min(max_block_rows, rows // min_blocks)
    start = max(sub, (start // sub) * sub)
    d = start
    while d >= sub:
        if rows % d == 0:
            return d
        d -= sub
    return sub


def pallas_add(x30: jax.Array, x32: jax.Array) -> jax.Array:
    assert x30.shape == x32.shape and x30.dtype == x32.dtype
    orig_shape = x30.shape
    dtype = x30.dtype
    itemsize = jnp.dtype(dtype).itemsize
    sub = _sublane_multiple(dtype)

    total = 1
    for d in orig_shape:
        total *= int(d)

    # Contiguous flatten: metadata-only, preserves NCHW element order.
    a1 = x30.reshape(total)
    b1 = x32.reshape(total)

    fac = _lane_dense_factorization(total, sub)
    if fac is None:
        # No exact lane-dense factorization: pad to a lane-dense,
        # sublane-aligned slab, run the kernel, slice back. Padding is ~free
        # for a memory-bound add; masked 28-wide stores are not.
        lanes = 128
        unit = lanes * 2 * sub
        padded_total = ((total + unit - 1) // unit) * unit
        pad = padded_total - total
        a1 = jnp.pad(a1, (0, pad))
        b1 = jnp.pad(b1, (0, pad))
        rows = padded_total // lanes
    else:
        rows, lanes = fac

    a2 = a1.reshape(rows, lanes)
    b2 = b1.reshape(rows, lanes)

    block_rows = _pick_block_rows(rows, lanes, itemsize, sub)
    grid = (rows // block_rows,)  # exact division: no partial last block

    out2 = pl.pallas_call(
        _add_kernel,
        out_shape=jax.ShapeDtypeStruct((rows, lanes), dtype),
        grid=grid,
        in_specs=[
            pl.BlockSpec((block_rows, lanes), lambda i: (i, 0)),
            pl.BlockSpec((block_rows, lanes), lambda i: (i, 0)),
        ],
        out_specs=pl.BlockSpec((block_rows, lanes), lambda i: (i, 0)),
        compiler_params=pltpu.CompilerParams(
            # Independent row blocks -> shardable across v7x's 2 TensorCores.
            dimension_semantics=("parallel",),
        ),
        cost_estimate=pl.CostEstimate(
            flops=total,
            transcendentals=0,
            bytes_accessed=3 * total * itemsize,
        ),
    )(a2, b2)

    out1 = out2.reshape(-1)
    if out1.shape[0] != total:
        out1 = out1[:total]
    return out1.reshape(orig_shape)


if __name__ == "__main__":
    key = jax.random.PRNGKey(0)
    k1, k2 = jax.random.split(key)
    # Shapes consistent with the module's forward: [1, 128, 28, 28]
    x30 = jax.random.normal(k1, (1, 128, 28, 28), dtype=jnp.float32)
    x32 = jax.random.normal(k2, (1, 128, 28, 28), dtype=jnp.float32)

    out = pallas_add(x30, x32)
    out = jax.block_until_ready(out)

    # Correctness check against plain JAX reference.
    ref = x30 + x32
    assert out.shape == ref.shape and out.dtype == ref.dtype
    assert jnp.allclose(out, ref), "mismatch vs reference"

    print("KERNEL_OK")
</pallas_src>

<mosaic_0001>
module attributes {stable_mosaic.version = 11 : i64} {
  func.func @_add_kernel(%arg0: i32, %arg1: memref<392x128xf32, #tpu.memory_space<vmem>>, %arg2: memref<392x128xf32, #tpu.memory_space<vmem>>, %arg3: memref<392x128xf32, #tpu.memory_space<vmem>>) attributes {dimension_semantics = [#tpu.dimension_semantics<parallel>], iteration_bounds = array<i64: 2>, scalar_prefetch = 0 : i64, scratch_operands = 0 : i64, tpu.core_type = #tpu.core_type<tc>, window_params = [{transform_indices = @transform_0, window_bounds = array<i64: 392, 128>}, {transform_indices = @transform_1, window_bounds = array<i64: 392, 128>}, {transform_indices = @transform_2, window_bounds = array<i64: 392, 128>}]} {
    %c0 = arith.constant 0 : index
    %c0_0 = arith.constant 0 : index
    %0 = vector.load %arg1[%c0, %c0_0] : memref<392x128xf32, #tpu.memory_space<vmem>>, vector<392x128xf32>
    %c0_1 = arith.constant 0 : index
    %c0_2 = arith.constant 0 : index
    %1 = vector.load %arg2[%c0_1, %c0_2] : memref<392x128xf32, #tpu.memory_space<vmem>>, vector<392x128xf32>
    %2 = arith.addf %0, %1 : vector<392x128xf32>
    %c0_3 = arith.constant 0 : index
    %c0_4 = arith.constant 0 : index
    %3 = vector.load %arg3[%c0_3, %c0_4] : memref<392x128xf32, #tpu.memory_space<vmem>>, vector<392x128xf32>
    tpu.vector_store %arg3[%c0_3, %c0_4], %2 {strides = array<i32>} : memref<392x128xf32, #tpu.memory_space<vmem>>, vector<392x128xf32>,
    return
  }
  func.func @transform_0(%arg0: i32) -> (i32, i32) {
    %c0_i32 = arith.constant 0 : i32
    %c0_i32_0 = arith.constant 0 : i32
    return %arg0, %c0_i32 : i32, i32
  }
  func.func @transform_1(%arg0: i32) -> (i32, i32) {
    %c0_i32 = arith.constant 0 : i32
    %c0_i32_0 = arith.constant 0 : i32
    return %arg0, %c0_i32 : i32, i32
  }
  func.func @transform_2(%arg0: i32) -> (i32, i32) {
    %c0_i32 = arith.constant 0 : i32
    %c0_i32_0 = arith.constant 0 : i32
    return %arg0, %c0_i32 : i32, i32
  }
}

</mosaic_0001>

<bundles_post_ra>
// kernel: tpu_custom_call.1
= control target key start
LH: loop header
LB: loop body
LE: loop exit
PB: predicated region body
PF: predicated region fallthrough
CT: control target
= control target key end

     0   :  { %7 = vsyncpa [#allocation3], 0  ;;  %s1106_s0 = inlined_call_operand.hbm [shape: f32[784,128], index: 0, kind: input, shape index: {}]   ;;  %s1107_s1 = inlined_call_operand.hbm [shape: f32[784,128], index: 1, kind: input, shape index: {}]   ;;  %s1108_s2 = inlined_call_operand.hbm [shape: f32[784,128], index: 2, kind: output, shape index: {}]  }
   0x1   :  { %9 = vsyncpa [#allocation3 + $0x1], 0 }
   0x2   :  { %10 = vsyncpa [#allocation6], 0 }
   0x3   :  { %12 = vsyncpa [#allocation6 + $0x1], 0 }
   0x4   :  { %13 = vsyncpa [#allocation4], 0 }
   0x5   :  { %15 = vsyncpa [#allocation4 + $0x1], 0  ;;  %s735_s9 = smov 0   ;;  %s737_s10 = smov 0  }
   0x6   :  { %s739_s11 = smov 0   ;;  %s741_s12 = smov 0  }
   0x7 LB: > { %s756_s13 = sadd.s32 4294967295, %s711_s12   ;;  %s511_s14 = sadd.s32 4294967294, %s711_s12   ;;  %s711_s12 = sphi %s741_s12, %s1123_s12   ;;  %s707_s11 = sphi %s739_s11, %s1122_s11   ;;  %s703_s10 = sphi %s737_s10, %s1121_s10   ;;  %s699_s9 = sphi %s735_s9, %s1120_s9  }
   0x8   : > { %s760_s15 = sadd.s32 1, %s711_s12   ;;  %s28_s16 = sadd.s32 1, %s707_s11 }
   0x9   : > { %s25_s17 = ssub.s32 %s711_s12, %s760_s15  ;;  %p35_p0 = scmp.ne.s32.totalorder %s707_s11, %s703_s10 }
   0xa   : > { %p26_p1 = scmp.eq.s32.totalorder %s25_s17, 0  ;;  %p36_p2 = scmp.eq.s32.totalorder %s711_s12, 0 }
   0xb   : > { %p41_p3 = scmp.ne.s32.totalorder %s703_s10, %s699_s9  ;;  %p42_p4 = scmp.eq.s32.totalorder %s756_s13, 0 }
   0xc   : > { %s772_s18 = scalar_select %p26_p1, %s707_s11, %s28_s16  }
   0xd   : > { %p37_p5 = por %p36_p2, %p35_p0  ;;  %p774_p6 = por %p42_p4, %p41_p3 }
   0xe   : > { %p91_p7 = scmp.eq.s32.totalorder %s756_s13, 1  ;;  %p97_p8 = scmp.eq.s32.totalorder %s511_s14, 1 }
   0xf   : > { %s1111_s19 = scalar_select %p774_p6, 1, 0 }
  0x10   : > { %p543_p10 = scmp.lt.s32.totalorder %s711_s12, 2  ;;  %p781_p11 = por %p91_p7, %p35_p0 }
  0x11   : > { %p785_p12 = por %p97_p8, %p41_p3  ;;  %s790_s22 = sand.u32 1, %s707_s11  }
  0x12   : > { %s1112_s20 = scalar_select %p781_p11, 1, 0 }
  0x13   : > { %s1113_s21 = scalar_select %p785_p12, 1, 0 }
  0x14   : > { %s520_s23 = smul.u32 6272, %s711_s12  ;;  %p801_p13 = pnand %p543_p10, %p37_p5 }
  0x15   : > { %s523_s24 = smul.u32 392, %s790_s22  ;;  %s118_s3 = scalar_lea.sflag [#allocation3], %s790_s22 }
  0x16   : > { %s799_s27 = scalar_lea.hbm %s1106_s0, %s520_s23  ;;  %p583_p1 = pneg %p801_p13 }
  0x17   : > { %s121_s29 = scalar_lea.vmem [#allocation2], %s523_s24  ;;  %s581_s4 = scalar_lea.hbm %s799_s27, 6272 }
  0x18   : > { %s128_s30 = sshll.u32 %s121_s29, 4  ;;  %p582_p0 = scmp.ne.s32.totalorder %s799_s27, %s581_s4  ;;  %s807_s30 = int_to_ptr.vmem [resolvable:$true] %s128_s30 }
  0x19   : > { %s586_s7 = scalar_lea.hbm %s1106_s0, 12544  ;;  %p587_p4 = scmp.lt.u32.totalorder %s799_s27, %s1106_s0 }
  0x1a   : > { %p584_p2 = pnand %p583_p1, %p582_p0  ;;  %p588_p5 = scmp.lt.u32.totalorder %s586_s7, %s581_s4 }
  0x1b   : > { %p590_p8 = scmp.lt.u32.totalorder %s581_s4, %s799_s27 }
  0x1c   : > { %p585_p3 = pneg %p584_p2  ;;  %p589_p7 = por %p588_p5, %p587_p4 }
  0x1e   : > { %p591_p10 = por %p590_p8, %p589_p7 }
  0x20   : > { %p592_p9 = pnand %p591_p10, %p585_p3 }
  0x22   : > { %595 = shalt.err (!%p592_p9)
}
  0x23   : > { %s596_s16 = scalar_lea.vmem %s807_s30, 6272  ;;  %s713_s17 = smov [#allocation2]  }
  0x24   : > { %p597_p0 = scmp.ne.s32.totalorder %s807_s30, %s596_s16  ;;  %s601_s25 = sshll.u32 %s713_s17, 4  ;;  %s602_s25 = int_to_ptr.vmem [resolvable:$false] %s601_s25 }
  0x25   : > { %s603_s26 = scalar_lea.vmem %s602_s25, 12544  ;;  %p604_p11 = scmp.lt.s32.totalorder %s807_s30, %s602_s25 }
  0x26   : > { %p599_p2 = pnand %p597_p0, %p583_p1  ;;  %p605_p4 = scmp.lt.s32.totalorder %s603_s26, %s596_s16 }
  0x28   : > { %p600_p12 = pneg %p599_p2  ;;  %p606_p5 = por %p605_p4, %p604_p11 }
  0x2a   : > { %p607_p7 = pnand %p606_p5, %p600_p12 }
  0x2c   : > { %610 = shalt.err (!%p607_p7)
}
  0x2d   : > { %s714_s29 = smov 128   ;;  %s715_s4 = smov 8  }
  0x2e   : > { %535 = dma.hbm_to_vmem [thread:$0]  (!%p801_p13), %s799_s27, 6272, %s807_s30, %s118_s3, %s714_s29, %s714_s29, %s715_s4  }
  0x2f   : > { %p516_p9 = scmp.ge.s32.totalorder %s711_s12, 1  ;;  %p157_p11 = scmp.lt.s32.totalorder %s711_s12, 3 }
  0x30   : > { %s851_s8 = scalar_lea.hbm %s1107_s1, %s520_s23  ;;  %s142_s14 = scalar_lea.vmem [#allocation5], %s523_s24 }
  0x31   : > { %p842_p12 = pnand %p516_p9, %p157_p11  ;;  %s149_s16 = sshll.u32 %s142_s14, 4  ;;  %s855_s16 = int_to_ptr.vmem [resolvable:$true] %s149_s16 }
  0x32   : > { %s139_s27 = scalar_lea.sflag [#allocation6], %s790_s22  ;;  %s611_s30 = scalar_lea.hbm %s851_s8, 6272 }
  0x33   : > { %p612_p3 = scmp.ne.s32.totalorder %s851_s8, %s611_s30  ;;  %s616_s23 = scalar_lea.hbm %s1107_s1, 12544 }
  0x34   : > { %p617_p0 = scmp.lt.u32.totalorder %s851_s8, %s1107_s1  ;;  %p618_p2 = scmp.lt.u32.totalorder %s616_s23, %s611_s30 }
  0x35   : > { %p614_p8 = pnand %p612_p3, %p583_p1  ;;  %p620_p5 = scmp.lt.u32.totalorder %s611_s30, %s851_s8 }
  0x36   : > { %p619_p4 = por %p618_p2, %p617_p0 }
  0x37   : > { %p615_p10 = pneg %p614_p8 }
  0x38   : > { %p621_p7 = por %p620_p5, %p619_p4 }
  0x3a   : > { %p622_p9 = pnand %p621_p7, %p615_p10 }
  0x3c   : > { %625 = shalt.err (!%p622_p9)
}
  0x3d   : > { %s626_s24 = scalar_lea.vmem %s855_s16, 6272  ;;  %s716_s6 = smov [#allocation5]  }
  0x3e   : > { %p627_p11 = scmp.ne.s32.totalorder %s855_s16, %s626_s24  ;;  %s631_s7 = sshll.u32 %s716_s6, 4  ;;  %s632_s7 = int_to_ptr.vmem [resolvable:$false] %s631_s7 }
  0x3f   : > { %s633_s14 = scalar_lea.vmem %s632_s7, 12544  ;;  %p634_p6 = scmp.lt.s32.totalorder %s855_s16, %s632_s7 }
  0x40   : > { %p629_p3 = pnand %p627_p11, %p583_p1  ;;  %p635_p0 = scmp.lt.s32.totalorder %s633_s14, %s626_s24 }
  0x42   : > { %p630_p8 = pneg %p629_p3  ;;  %p636_p2 = por %p635_p0, %p634_p6 }
  0x44   : > { %p637_p4 = pnand %p636_p2, %p630_p8 }
  0x46   : > { %640 = shalt.err (!%p637_p4)
}
  0x47   : > { %538 = dma.hbm_to_vmem [thread:$0]  (!%p801_p13), %s851_s8, 6272, %s855_s16, %s139_s27, %s714_s29, %s714_s29, %s715_s4  }
  0x48   : > { %161 = sbr.rel (%p842_p12) target bundleno = 136 (0x88), region = 28  ;;  %s889_s30 = sand.u32 (!%p842_p12), 1, %s703_s10  }
  0x49   : > { %s525_s3 = smul.u32 (!%p842_p12), 392, %s889_s30  ;;  %s164_s17 = scalar_lea.sflag (!%p842_p12), [#allocation3], %s889_s30 }
  0x4a   : > { %p1116_p6 = scmp.ne.s32.totalorder (!%p842_p12), %s1111_s19, 0 }
  0x4b   : > { %s893_s28 = scalar_lea.vmem (!%p842_p12), [#allocation2], %s525_s3 }
  0x4f   : > { %686 = dma.done.wait (%p1116_p6), %s164_s17, 6272  }
  0x50   : > { %688 = vsyncadd (%p1116_p6), %s164_s17, 4294961024  ;;  %s173_s22 = scalar_lea.sflag [#allocation6], %s889_s30  ;;  %s900_s29 = scalar_lea.vmem [#allocation5], %s525_s3 }
  0x51   : > { %690 = dma.done.wait (%p1116_p6), %s173_s22, 6272  }
  0x52   : > { %692 = vsyncadd (%p1116_p6), %s173_s22, 4294961024  ;;  %v205_v0 = vld [vmem:[%s893_s28] sm:$0xff]  ;;  %v254_v1 = vld [vmem:[%s900_s29] sm:$0xff]  ;;  %s915_s19 = scalar_lea.vmem [#allocation7], %s525_s3  ;;  %s522_s4 = smul.u32 6272, %s756_s13 }
  0x53   : > { %v206_v2 = vld [vmem:[%s893_s28 + $0x8] sm:$0xff]  ;;  %v303_v3 = vadd.f32 %v254_v1, %v205_v0  ;;  %v255_v4 = vld [vmem:[%s900_s29 + $0x8] sm:$0xff]  ;;  %v207_v5 = vld [vmem:[%s893_s28 + $0x10] sm:$0xff]  ;;  %s415_s5 = sshll.u32 %s915_s19, 4  ;;  %s402_s27 = scalar_lea.sflag [#allocation4], %s889_s30  ;;  %s1053_s5 = int_to_ptr.vmem [resolvable:$true] %s415_s5 }
  0x54   : > { %v256_v6 = vld [vmem:[%s900_s29 + $0x10] sm:$0xff]  ;;  %v304_v7 = vadd.f32 %v255_v4, %v206_v2  ;;  %v208_v9 = vld [vmem:[%s893_s28 + $0x18] sm:$0xff]  ;;  %v257_v10 = vld [vmem:[%s900_s29 + $0x18] sm:$0xff]  ;;  %s1059_s16 = scalar_lea.hbm %s1108_s2, %s522_s4  ;;  %s641_s23 = scalar_lea.vmem %s1053_s5, 6272 }
  0x55   : > { %v305_v8 = vadd.f32 %v256_v6, %v207_v5  ;;  %v209_v11 = vld [vmem:[%s893_s28 + $0x20] sm:$0xff]  ;;  %352 = vst [vmem:[%s915_s19] sm:$0xff] %v303_v3  ;;  %v306_v12 = vadd.f32 %v257_v10, %v208_v9  ;;  %v258_v13 = vld [vmem:[%s900_s29 + $0x20] sm:$0xff]  ;;  %v210_v14 = vld [vmem:[%s893_s28 + $0x28] sm:$0xff]  ;;  %p642_p13 = scmp.ne.s32.totalorder %s1053_s5, %s641_s23  ;;  %p1117_p1 = scmp.ne.s32.totalorder %s1112_s20, 0 }
  0x56   : > { %v259_v15 = vld [vmem:[%s900_s29 + $0x28] sm:$0xff]  ;;  %353 = vst [vmem:[%s915_s19 + $0x8] sm:$0xff] %v304_v7  ;;  %v307_v16 = vadd.f32 %v258_v13, %v209_v11  ;;  %v211_v18 = vld [vmem:[%s893_s28 + $0x30] sm:$0xff]  ;;  %v260_v19 = vld [vmem:[%s900_s29 + $0x30] sm:$0xff]  ;;  %s717_s25 = smov [#allocation7]  }
  0x57   : > { %354 = vst [vmem:[%s915_s19 + $0x10] sm:$0xff] %v305_v8  ;;  %v308_v17 = vadd.f32 %v259_v15, %v210_v14  ;;  %v212_v20 = vld [vmem:[%s893_s28 + $0x38] sm:$0xff]  ;;  %355 = vst [vmem:[%s915_s19 + $0x18] sm:$0xff] %v306_v12  ;;  %v309_v21 = vadd.f32 %v260_v19, %v211_v18  ;;  %v261_v22 = vld [vmem:[%s900_s29 + $0x38] sm:$0xff]  ;;  %p643_p12 = pnand %p642_p13, %p1117_p1  ;;  %s645_s26 = sshll.u32 %s717_s25, 4  ;;  %s646_s26 = int_to_ptr.vmem [resolvable:$false] %s645_s26 }
  0x58   : > { %v213_v23 = vld [vmem:[%s893_s28 + $0x40] sm:$0xff]  ;;  %v262_v24 = vld [vmem:[%s900_s29 + $0x40] sm:$0xff]  ;;  %356 = vst [vmem:[%s915_s19 + $0x20] sm:$0xff] %v307_v16  ;;  %v310_v25 = vadd.f32 %v261_v22, %v212_v20  ;;  %v214_v27 = vld [vmem:[%s893_s28 + $0x48] sm:$0xff]  ;;  %s647_s24 = scalar_lea.vmem %s646_s26, 12544  ;;  %p648_p5 = scmp.lt.s32.totalorder %s1053_s5, %s646_s26 }
  0x59   : > { %357 = vst [vmem:[%s915_s19 + $0x28] sm:$0xff] %v308_v17  ;;  %v311_v26 = vadd.f32 %v262_v24, %v213_v23  ;;  %v263_v28 = vld [vmem:[%s900_s29 + $0x48] sm:$0xff]  ;;  %v215_v29 = vld [vmem:[%s893_s28 + $0x50] sm:$0xff]  ;;  %358 = vst [vmem:[%s915_s19 + $0x30] sm:$0xff] %v309_v21  ;;  %p644_p10 = pneg %p643_p12  ;;  %p649_p7 = scmp.lt.s32.totalorder %s647_s24, %s641_s23 }
  0x5a   : > { %v312_v30 = vadd.f32 %v263_v28, %v214_v27  ;;  %v264_v31 = vld [vmem:[%s900_s29 + $0x50] sm:$0xff]  ;;  %v216_v32 = vld [vmem:[%s893_s28 + $0x58] sm:$0xff]  ;;  %v265_v33 = vld [vmem:[%s900_s29 + $0x58] sm:$0xff]  ;;  %359 = vst [vmem:[%s915_s19 + $0x38] sm:$0xff] %v310_v25 }
  0x5b   : > { %360 = vst [vmem:[%s915_s19 + $0x40] sm:$0xff] %v311_v26  ;;  %v313_v34 = vadd.f32 %v264_v31, %v215_v29  ;;  %v314_v35 = vadd.f32 %v265_v33, %v216_v32  ;;  %v217_v36 = vld [vmem:[%s893_s28 + $0x60] sm:$0xff]  ;;  %v266_v37 = vld [vmem:[%s900_s29 + $0x60] sm:$0xff]  ;;  %v218_v38 = vld [vmem:[%s893_s28 + $0x68] sm:$0xff]  ;;  %p650_p9 = por %p649_p7, %p648_p5 }
  0x5c   : > { %361 = vst [vmem:[%s915_s19 + $0x48] sm:$0xff] %v312_v30  ;;  %v315_v39 = vadd.f32 %v266_v37, %v217_v36  ;;  %v267_v40 = vld [vmem:[%s900_s29 + $0x68] sm:$0xff]  ;;  %v219_v41 = vld [vmem:[%s893_s28 + $0x70] sm:$0xff]  ;;  %v268_v42 = vld [vmem:[%s900_s29 + $0x70] sm:$0xff] }
  0x5d   : > { %362 = vst [vmem:[%s915_s19 + $0x50] sm:$0xff] %v313_v34  ;;  %363 = vst [vmem:[%s915_s19 + $0x58] sm:$0xff] %v314_v35  ;;  %v316_v43 = vadd.f32 %v267_v40, %v218_v38  ;;  %v317_v44 = vadd.f32 %v268_v42, %v219_v41  ;;  %v220_v45 = vld [vmem:[%s893_s28 + $0x78] sm:$0xff]  ;;  %v269_v46 = vld [vmem:[%s900_s29 + $0x78] sm:$0xff]  ;;  %p651_p11 = pnand %p650_p9, %p644_p10 }
  0x5e   : > { %v221_v47 = vld [vmem:[%s893_s28 + $0x80] sm:$0xff]  ;;  %364 = vst [vmem:[%s915_s19 + $0x60] sm:$0xff] %v315_v39  ;;  %v318_v48 = vadd.f32 %v269_v46, %v220_v45  ;;  %v270_v49 = vld [vmem:[%s900_s29 + $0x80] sm:$0xff]  ;;  %v222_v50 = vld [vmem:[%s893_s28 + $0x88] sm:$0xff] }
  0x5f   : > { %v271_v51 = vld [vmem:[%s900_s29 + $0x88] sm:$0xff]  ;;  %365 = vst [vmem:[%s915_s19 + $0x68] sm:$0xff] %v316_v43  ;;  %366 = vst [vmem:[%s915_s19 + $0x70] sm:$0xff] %v317_v44  ;;  %v319_v52 = vadd.f32 %v270_v49, %v221_v47  ;;  %v223_v54 = vld [vmem:[%s893_s28 + $0x90] sm:$0xff] }
  0x60   : > { %v320_v53 = vadd.f32 %v271_v51, %v222_v50  ;;  %v272_v55 = vld [vmem:[%s900_s29 + $0x90] sm:$0xff]  ;;  %v224_v56 = vld [vmem:[%s893_s28 + $0x98] sm:$0xff]  ;;  %367 = vst [vmem:[%s915_s19 + $0x78] sm:$0xff] %v318_v48  ;;  %v273_v58 = vld [vmem:[%s900_s29 + $0x98] sm:$0xff] }
  0x61   : > { %v321_v57 = vadd.f32 %v272_v55, %v223_v54  ;;  %v225_v59 = vld [vmem:[%s893_s28 + $0xa0] sm:$0xff]  ;;  %v274_v60 = vld [vmem:[%s900_s29 + $0xa0] sm:$0xff]  ;;  %368 = vst [vmem:[%s915_s19 + $0x80] sm:$0xff] %v319_v52  ;;  %v322_v61 = vadd.f32 %v273_v58, %v224_v56  ;;  %v226_v63 = vld [vmem:[%s893_s28 + $0xa8] sm:$0xff] }
  0x62   : > { %369 = vst [vmem:[%s915_s19 + $0x88] sm:$0xff] %v320_v53  ;;  %v323_v62 = vadd.f32 %v274_v60, %v225_v59  ;;  %v275_v0 = vld [vmem:[%s900_s29 + $0xa8] sm:$0xff]  ;;  %v227_v1 = vld [vmem:[%s893_s28 + $0xb0] sm:$0xff]  ;;  %v276_v3 = vld [vmem:[%s900_s29 + $0xb0] sm:$0xff] }
  0x63   : > { %370 = vst [vmem:[%s915_s19 + $0x90] sm:$0xff] %v321_v57  ;;  %v324_v2 = vadd.f32 %v275_v0, %v226_v63  ;;  %v228_v4 = vld [vmem:[%s893_s28 + $0xb8] sm:$0xff]  ;;  %v277_v5 = vld [vmem:[%s900_s29 + $0xb8] sm:$0xff]  ;;  %371 = vst [vmem:[%s915_s19 + $0x98] sm:$0xff] %v322_v61  ;;  %v325_v6 = vadd.f32 %v276_v3, %v227_v1 }
  0x64   : > { %372 = vst [vmem:[%s915_s19 + $0xa0] sm:$0xff] %v323_v62  ;;  %v326_v7 = vadd.f32 %v277_v5, %v228_v4  ;;  %v229_v8 = vld [vmem:[%s893_s28 + $0xc0] sm:$0xff]  ;;  %v278_v9 = vld [vmem:[%s900_s29 + $0xc0] sm:$0xff]  ;;  %v230_v10 = vld [vmem:[%s893_s28 + $0xc8] sm:$0xff] }
  0x65   : > { %373 = vst [vmem:[%s915_s19 + $0xa8] sm:$0xff] %v324_v2  ;;  %v327_v11 = vadd.f32 %v278_v9, %v229_v8  ;;  %v279_v12 = vld [vmem:[%s900_s29 + $0xc8] sm:$0xff]  ;;  %v231_v13 = vld [vmem:[%s893_s28 + $0xd0] sm:$0xff]  ;;  %v280_v14 = vld [vmem:[%s900_s29 + $0xd0] sm:$0xff] }
  0x66   : > { %374 = vst [vmem:[%s915_s19 + $0xb0] sm:$0xff] %v325_v6  ;;  %375 = vst [vmem:[%s915_s19 + $0xb8] sm:$0xff] %v326_v7  ;;  %v328_v15 = vadd.f32 %v279_v12, %v230_v10  ;;  %v329_v16 = vadd.f32 %v280_v14, %v231_v13  ;;  %v232_v17 = vld [vmem:[%s893_s28 + $0xd8] sm:$0xff]  ;;  %v281_v18 = vld [vmem:[%s900_s29 + $0xd8] sm:$0xff] }
  0x67   : > { %v233_v19 = vld [vmem:[%s893_s28 + $0xe0] sm:$0xff]  ;;  %376 = vst [vmem:[%s915_s19 + $0xc0] sm:$0xff] %v327_v11  ;;  %v330_v20 = vadd.f32 %v281_v18, %v232_v17  ;;  %v282_v21 = vld [vmem:[%s900_s29 + $0xe0] sm:$0xff]  ;;  %v234_v22 = vld [vmem:[%s893_s28 + $0xe8] sm:$0xff] }
  0x68   : > { %v283_v23 = vld [vmem:[%s900_s29 + $0xe8] sm:$0xff]  ;;  %377 = vst [vmem:[%s915_s19 + $0xc8] sm:$0xff] %v328_v15  ;;  %378 = vst [vmem:[%s915_s19 + $0xd0] sm:$0xff] %v329_v16  ;;  %v331_v24 = vadd.f32 %v282_v21, %v233_v19  ;;  %v235_v26 = vld [vmem:[%s893_s28 + $0xf0] sm:$0xff] }
  0x69   : > { %v332_v25 = vadd.f32 %v283_v23, %v234_v22  ;;  %v284_v27 = vld [vmem:[%s900_s29 + $0xf0] sm:$0xff]  ;;  %v236_v28 = vld [vmem:[%s893_s28 + $0xf8] sm:$0xff]  ;;  %379 = vst [vmem:[%s915_s19 + $0xd8] sm:$0xff] %v330_v20  ;;  %v285_v30 = vld [vmem:[%s900_s29 + $0xf8] sm:$0xff] }
  0x6a   : > { %v333_v29 = vadd.f32 %v284_v27, %v235_v26  ;;  %v237_v31 = vld [vmem:[%s893_s28 + $0x100] sm:$0xff]  ;;  %v286_v32 = vld [vmem:[%s900_s29 + $0x100] sm:$0xff]  ;;  %380 = vst [vmem:[%s915_s19 + $0xe0] sm:$0xff] %v331_v24  ;;  %v334_v33 = vadd.f32 %v285_v30, %v236_v28  ;;  %v238_v35 = vld [vmem:[%s893_s28 + $0x108] sm:$0xff] }
  0x6b   : > { %381 = vst [vmem:[%s915_s19 + $0xe8] sm:$0xff] %v332_v25  ;;  %v335_v34 = vadd.f32 %v286_v32, %v237_v31  ;;  %v287_v36 = vld [vmem:[%s900_s29 + $0x108] sm:$0xff]  ;;  %v239_v37 = vld [vmem:[%s893_s28 + $0x110] sm:$0xff]  ;;  %v288_v39 = vld [vmem:[%s900_s29 + $0x110] sm:$0xff] }
  0x6c   : > { %382 = vst [vmem:[%s915_s19 + $0xf0] sm:$0xff] %v333_v29  ;;  %v336_v38 = vadd.f32 %v287_v36, %v238_v35  ;;  %v240_v40 = vld [vmem:[%s893_s28 + $0x118] sm:$0xff]  ;;  %v289_v41 = vld [vmem:[%s900_s29 + $0x118] sm:$0xff]  ;;  %383 = vst [vmem:[%s915_s19 + $0xf8] sm:$0xff] %v334_v33  ;;  %v337_v42 = vadd.f32 %v288_v39, %v239_v37 }
  0x6d   : > { %384 = vst [vmem:[%s915_s19 + $0x100] sm:$0xff] %v335_v34  ;;  %v338_v43 = vadd.f32 %v289_v41, %v240_v40  ;;  %v241_v44 = vld [vmem:[%s893_s28 + $0x120] sm:$0xff]  ;;  %v290_v45 = vld [vmem:[%s900_s29 + $0x120] sm:$0xff]  ;;  %v242_v46 = vld [vmem:[%s893_s28 + $0x128] sm:$0xff] }
  0x6e   : > { %385 = vst [vmem:[%s915_s19 + $0x108] sm:$0xff] %v336_v38  ;;  %v339_v47 = vadd.f32 %v290_v45, %v241_v44  ;;  %v291_v48 = vld [vmem:[%s900_s29 + $0x128] sm:$0xff]  ;;  %v243_v49 = vld [vmem:[%s893_s28 + $0x130] sm:$0xff]  ;;  %v292_v50 = vld [vmem:[%s900_s29 + $0x130] sm:$0xff] }
  0x6f   : > { %386 = vst [vmem:[%s915_s19 + $0x110] sm:$0xff] %v337_v42  ;;  %387 = vst [vmem:[%s915_s19 + $0x118] sm:$0xff] %v338_v43  ;;  %v340_v51 = vadd.f32 %v291_v48, %v242_v46  ;;  %v341_v52 = vadd.f32 %v292_v50, %v243_v49  ;;  %v244_v53 = vld [vmem:[%s893_s28 + $0x138] sm:$0xff]  ;;  %v293_v54 = vld [vmem:[%s900_s29 + $0x138] sm:$0xff] }
  0x70   : > { %v245_v55 = vld [vmem:[%s893_s28 + $0x140] sm:$0xff]  ;;  %388 = vst [vmem:[%s915_s19 + $0x120] sm:$0xff] %v339_v47  ;;  %v342_v56 = vadd.f32 %v293_v54, %v244_v53  ;;  %v294_v57 = vld [vmem:[%s900_s29 + $0x140] sm:$0xff]  ;;  %v246_v58 = vld [vmem:[%s893_s28 + $0x148] sm:$0xff] }
  0x71   : > { %v295_v59 = vld [vmem:[%s900_s29 + $0x148] sm:$0xff]  ;;  %389 = vst [vmem:[%s915_s19 + $0x128] sm:$0xff] %v340_v51  ;;  %390 = vst [vmem:[%s915_s19 + $0x130] sm:$0xff] %v341_v52  ;;  %v343_v60 = vadd.f32 %v294_v57, %v245_v55  ;;  %v247_v62 = vld [vmem:[%s893_s28 + $0x150] sm:$0xff] }
  0x72   : > { %v344_v61 = vadd.f32 %v295_v59, %v246_v58  ;;  %v296_v63 = vld [vmem:[%s900_s29 + $0x150] sm:$0xff]  ;;  %v248_v0 = vld [vmem:[%s893_s28 + $0x158] sm:$0xff]  ;;  %391 = vst [vmem:[%s915_s19 + $0x138] sm:$0xff] %v342_v56  ;;  %v297_v2 = vld [vmem:[%s900_s29 + $0x158] sm:$0xff] }
  0x73   : > { %v345_v1 = vadd.f32 %v296_v63, %v247_v62  ;;  %v249_v3 = vld [vmem:[%s893_s28 + $0x160] sm:$0xff]  ;;  %v298_v4 = vld [vmem:[%s900_s29 + $0x160] sm:$0xff]  ;;  %392 = vst [vmem:[%s915_s19 + $0x140] sm:$0xff] %v343_v60  ;;  %v346_v5 = vadd.f32 %v297_v2, %v248_v0  ;;  %v250_v7 = vld [vmem:[%s893_s28 + $0x168] sm:$0xff] }
  0x74   : > { %393 = vst [vmem:[%s915_s19 + $0x148] sm:$0xff] %v344_v61  ;;  %v347_v6 = vadd.f32 %v298_v4, %v249_v3  ;;  %v299_v8 = vld [vmem:[%s900_s29 + $0x168] sm:$0xff]  ;;  %v251_v9 = vld [vmem:[%s893_s28 + $0x170] sm:$0xff]  ;;  %v300_v11 = vld [vmem:[%s900_s29 + $0x170] sm:$0xff] }
  0x75   : > { %394 = vst [vmem:[%s915_s19 + $0x150] sm:$0xff] %v345_v1  ;;  %v348_v10 = vadd.f32 %v299_v8, %v250_v7  ;;  %v252_v12 = vld [vmem:[%s893_s28 + $0x178] sm:$0xff]  ;;  %v301_v13 = vld [vmem:[%s900_s29 + $0x178] sm:$0xff]  ;;  %395 = vst [vmem:[%s915_s19 + $0x158] sm:$0xff] %v346_v5  ;;  %v349_v14 = vadd.f32 %v300_v11, %v251_v9 }
  0x76   : > { %396 = vst [vmem:[%s915_s19 + $0x160] sm:$0xff] %v347_v6  ;;  %v350_v15 = vadd.f32 %v301_v13, %v252_v12  ;;  %v253_v16 = vld [vmem:[%s893_s28 + $0x180] sm:$0xff]  ;;  %v302_v17 = vld [vmem:[%s900_s29 + $0x180] sm:$0xff] }
  0x77   : > { %397 = vst [vmem:[%s915_s19 + $0x168] sm:$0xff] %v348_v10  ;;  %v351_v18 = vadd.f32 %v302_v17, %v253_v16  ;;  %398 = vst [vmem:[%s915_s19 + $0x170] sm:$0xff] %v349_v14 }
  0x78   : > { %399 = vst [vmem:[%s915_s19 + $0x178] sm:$0xff] %v350_v15 }
  0x79   : > { %400 = vst [vmem:[%s915_s19 + $0x180] sm:$0xff] %v351_v18 }
  0x7a   : > { %654 = shalt.err (!%p651_p11)
}
  0x7b   : > { %s655_s6 = scalar_lea.hbm %s1059_s16, 6272  ;;  %s659_s3 = scalar_lea.hbm %s1108_s2, 12544 }
  0x7c   : > { %p656_p3 = scmp.ne.s32.totalorder %s1059_s16, %s655_s6  ;;  %p660_p2 = scmp.lt.u32.totalorder %s1059_s16, %s1108_s2 }
  0x7d   : > { %p661_p4 = scmp.lt.u32.totalorder %s659_s3, %s655_s6  ;;  %p663_p13 = scmp.lt.u32.totalorder %s655_s6, %s1059_s16 }
  0x7e   : > { %p657_p8 = pnand %p656_p3, %p1117_p1 }
  0x7f   : > { %p662_p6 = por %p661_p4, %p660_p2 }
  0x80   : > { %p658_p0 = pneg %p657_p8 }
  0x81   : > { %p664_p12 = por %p663_p13, %p662_p6 }
  0x83   : > { %p665_p10 = pnand %p664_p12, %p658_p0 }
  0x85   : > { %668 = shalt.err (!%p665_p10)
}
  0x86   : > { %s718_s22 = smov 128   ;;  %s719_s29 = smov 8  }
  0x87   : > { %530 = dma.vmem_to_hbm [thread:$0]  (%p1117_p1), %s1053_s5, 6272, %s1059_s16, %s402_s27, %s718_s22, %s718_s22, %s719_s29  }
  0x88 PF: > { %s430_s19 = sand.u32 1, %s699_s9   ;;  %p1118_p5 = scmp.ne.s32.totalorder %s1113_s21, 0 }
  0x89   : > { %p1119_p7 = scmp.ge.s32.totalorder %s711_s12, 2  ;;  %s431_s4 = scalar_lea.sflag [#allocation4], %s430_s19 }
  0x8b   : > { %p540_p9 = pnand %p1119_p7, %p1118_p5 }
  0x8d   : > { %694 = dma.done.wait (!%p540_p9), %s431_s4, 6272  }
  0x8e   : > { %696 = vsyncadd (!%p540_p9), %s431_s4, 4294961024  ;;  %p18_p11 = scmp.ge.s32.totalorder %s760_s15, 4   ;;  %s1120_s9 = smov %s703_s10 }
  0x8f   : > { %s1121_s10 = smov %s707_s11  ;;  %s1122_s11 = smov %s772_s18 }
  0x90   : > { %s1123_s12 = smov %s760_s15  ;;  %20 = sbr.rel (!%p18_p11) target bundleno = 7 (0x7), region = 86 }
  0x97   :  { %436 = vsyncpa [#allocation3], 1 }
  0x98   :  { %438 = vsyncpa [#allocation3 + $0x1], 1 }
  0x99   :  { %439 = vsyncpa [#allocation6], 1 }
  0x9a   :  { %441 = vsyncpa [#allocation6 + $0x1], 1 }
  0x9b   :  { %442 = vsyncpa [#allocation4], 1 }
  0x9c   :  { %444 = vsyncpa [#allocation4 + $0x1], 1 }

</bundles_post_ra>
